<compile_context>
chip_gen: v7x
topology: tpu7x:2x2x1
jax: 0.10.0
libtpu: 0.0.40
codegen_flags: <defaults>
</compile_context>

<pallas_src>
import functools

import jax
import jax.numpy as jnp
import numpy as np
from jax import lax
from jax.experimental import pallas as pl
from jax.experimental.pallas import tpu as pltpu


# ----------------------------------------------------------------------------
# Kernel 1: fused linear projection (no bias) + L2 normalize + row mask
#   y = normalize(x @ W^T) * mask      (mask = 1 for query rows, pad-mask for doc rows)
# ----------------------------------------------------------------------------
def proj_norm_kernel(x_ref, w_ref, m_ref, o_ref):
    # x_ref: (TR, H) bf16 | w_ref: (H, F) bf16 | m_ref: (TR, 1) f32 | o_ref: (TR, F) bf16
    y = jnp.dot(x_ref[...], w_ref[...], preferred_element_type=jnp.float32)   # MXU, f32 acc
    sumsq = jnp.sum(y * y, axis=-1, keepdims=True)                            # (TR, 1) f32
    inv_norm = lax.rsqrt(jnp.maximum(sumsq, 1e-24))     # == x / max(||x||, 1e-12) (F.normalize)
    o_ref[...] = (y * inv_norm * m_ref[...]).astype(o_ref.dtype)


def proj_normalize(x, w_t, mask, tr=256):
    """x: (R, H) bf16, w_t: (H, F) bf16 (= linear.weight.T), mask: (R, 1) f32 -> (R, F) bf16."""
    R, H = x.shape
    F = w_t.shape[1]
    n_blocks = -(-R // tr)
    R_pad = n_blocks * tr
    if R_pad != R:
        # zero-padded rows stay exactly zero after normalize (rsqrt is clamped), sliced off below
        x = jnp.pad(x, ((0, R_pad - R), (0, 0)))
        mask = jnp.pad(mask, ((0, R_pad - R), (0, 0)))
    out = pl.pallas_call(
        proj_norm_kernel,
        out_shape=jax.ShapeDtypeStruct((R_pad, F), jnp.bfloat16),
        grid=(n_blocks,),
        in_specs=[
            pl.BlockSpec((tr, H), lambda i: (i, 0)),
            pl.BlockSpec((H, F), lambda i: (0, 0)),    # same block each step -> W stays resident
            pl.BlockSpec((tr, 1), lambda i: (i, 0)),
        ],
        out_specs=pl.BlockSpec((tr, F), lambda i: (i, 0)),
        compiler_params=pltpu.CompilerParams(dimension_semantics=("parallel",)),
    )(x, w_t, mask)
    return out[:R]


# ----------------------------------------------------------------------------
# Kernel 2: MaxSim (cosine):  sim = Q . D  (contract on F) ; mask ; max over L_d ; mean over L_q
#   grid = (B,), N folded into the block; broadcast over N handled in-kernel.
# ----------------------------------------------------------------------------
def maxsim_kernel(q_ref, d_ref, m_ref, o_ref, *, n_q, n_d, inv_lq):
    # q_ref: (n_q, L_q, F) bf16 | d_ref: (n_d, L_d, F) bf16 | m_ref: (n_d, 1, L_d) f32 | o_ref: (1, N) f32
    neg_big = jnp.float32(-1e30)
    n = 0
    for iq in range(n_q):
        q = q_ref[iq]                                            # (L_q, F)
        for idd in range(n_d):
            d = d_ref[idd]                                       # (L_d, F)
            m = m_ref[idd]                                       # (1, L_d)
            # contract over F directly: no in-kernel transpose of d (no XLU pass)
            sim = lax.dot_general(q, d, (((1,), (1,)), ((), ())),
                                  preferred_element_type=jnp.float32)   # (L_q, L_d) f32
            sim = jnp.where(m > 0.0, sim, neg_big)               # mask padded doc tokens
            mx = jnp.max(sim, axis=-1, keepdims=True)            # (L_q, 1)
            o_ref[0, n] = jnp.sum(mx) * inv_lq                   # mean over query tokens
            n += 1


def maxsim(q, d, m):
    """q: (B, Nq, L_q, F) bf16, d: (B, Nd, L_d, F) bf16, m: (B, Nd, 1, L_d) f32 -> (B, N) f32."""
    B, Nq, L_q, F = q.shape
    Nd, L_d = d.shape[1], d.shape[2]
    assert min(Nq, Nd) == 1, "one of the per-batch N axes must broadcast (ColBERT guarantees this)"
    N = max(Nq, Nd)
    kernel = functools.partial(maxsim_kernel, n_q=Nq, n_d=Nd, inv_lq=1.0 / L_q)
    return pl.pallas_call(
        kernel,
        out_shape=jax.ShapeDtypeStruct((B, N), jnp.float32),
        grid=(B,),
        in_specs=[
            pl.BlockSpec((None, Nq, L_q, F), lambda b: (b, 0, 0, 0)),
            pl.BlockSpec((None, Nd, L_d, F), lambda b: (b, 0, 0, 0)),
            pl.BlockSpec((None, Nd, 1, L_d), lambda b: (b, 0, 0, 0)),
        ],
        out_specs=pl.BlockSpec((1, N), lambda b: (b, 0)),
        compiler_params=pltpu.CompilerParams(dimension_semantics=("parallel",)),
    )(q, d, m)


# ----------------------------------------------------------------------------
# ColBERT forward (cosine similarity, normalize=True, intra_batch=False, skiplist=None)
# ----------------------------------------------------------------------------
def colbert_forward(q_ids, q_attn, d_ids, d_attn, emb_table, w_t, pad_token_id):
    del q_attn, d_attn  # only consumed by the (stubbed) transformer backbone
    B_q, L_q = q_ids.shape
    B_d, L_d = d_ids.shape
    B = min(B_q, B_d)
    H = emb_table.shape[1]
    F = w_t.shape[1]

    # --- backbone stub: deterministic embedding lookup -> hidden states ---
    q_hidden = jnp.take(emb_table, q_ids, axis=0)       # (B_q, L_q, H) f32
    d_hidden = jnp.take(emb_table, d_ids, axis=0)       # (B_d, L_d, H) f32

    # --- fused query()/doc(): one projection+normalize call over all token rows, bf16 MXU ---
    x = jnp.concatenate(
        [q_hidden.reshape(B_q * L_q, H), d_hidden.reshape(B_d * L_d, H)],
        axis=0).astype(jnp.bfloat16)                                         # (R, H) bf16
    d_mask_bool = d_ids != pad_token_id                                      # (B_d, L_d) bool
    row_mask = jnp.concatenate(
        [jnp.ones((B_q * L_q,), jnp.float32),
         d_mask_bool.reshape(-1).astype(jnp.float32)], axis=0)[:, None]      # (R, 1) f32
    vecs = proj_normalize(x, w_t.astype(jnp.bfloat16), row_mask)             # (R, F) bf16

    # --- regroup per-batch (no broadcast_to: N-broadcast happens inside the MaxSim kernel) ---
    q_vec = vecs[: B_q * L_q].reshape(B, B_q // B, L_q, F)
    d_vec = vecs[B_q * L_q:].reshape(B, B_d // B, L_d, F)
    d_mask = d_mask_bool.reshape(B, B_d // B, 1, L_d).astype(jnp.float32)

    return maxsim(q_vec, d_vec, d_mask)                                      # (B, N) f32


# ----------------------------------------------------------------------------
# Plain-JAX reference mirroring the kernel's mixed precision (bf16 MXU / f32 post-ops)
# ----------------------------------------------------------------------------
def colbert_reference(q_ids, d_ids, emb_table, w_t, pad_token_id):
    B_q, L_q = q_ids.shape
    B_d, L_d = d_ids.shape
    B = min(B_q, B_d)
    F = w_t.shape[1]
    w_bf = w_t.astype(jnp.bfloat16)

    def proj_norm(ids, mask):
        h = jnp.take(emb_table, ids, axis=0).astype(jnp.bfloat16)
        y = jnp.dot(h, w_bf, preferred_element_type=jnp.float32)
        inv = lax.rsqrt(jnp.maximum(jnp.sum(y * y, axis=-1, keepdims=True), 1e-24))
        return (y * inv * mask).astype(jnp.bfloat16)

    q = proj_norm(q_ids, jnp.float32(1.0))
    d_mask = d_ids != pad_token_id
    d = proj_norm(d_ids, d_mask[..., None].astype(jnp.float32))

    q = q.reshape(B, -1, L_q, F)
    d = d.reshape(B, -1, L_d, F)
    dm = d_mask.reshape(B, -1, L_d)
    N = max(q.shape[1], d.shape[1])
    qb = jnp.broadcast_to(q, (B, N, L_q, F))
    db = jnp.broadcast_to(d, (B, N, L_d, F))
    dmb = jnp.broadcast_to(dm, (B, N, L_d))
    sim = jnp.einsum("bnqf,bnkf->bnqk", qb, db, preferred_element_type=jnp.float32)
    sim = jnp.where(dmb[:, :, None, :], sim, -1e30)
    return sim.max(axis=-1).mean(axis=-1)


if __name__ == "__main__":
    # Small, deterministic QPP-style config: B=2 samples, 1 query + 2 passages per sample.
    B, N_q, N_p = 2, 1, 2
    L_q, L_d = 16, 32
    H, F = 128, 128          # backbone hidden size, ColBERT output dim (lane-aligned)
    VOCAB = 512
    PAD = 0

    key = jax.random.PRNGKey(0)
    k_emb, k_w, k_q, k_d = jax.random.split(key, 4)

    emb_table = jax.random.normal(k_emb, (VOCAB, H), jnp.float32) * 0.02
    linear_w = jax.random.normal(k_w, (F, H), jnp.float32) * 0.02   # nn.Linear(H, F, bias=False).weight
    w_t = linear_w.T                                                # (H, F)

    q_ids = jax.random.randint(k_q, (B * N_q, L_q), 1, VOCAB, dtype=jnp.int32)
    d_ids = jax.random.randint(k_d, (B * N_p, L_d), 1, VOCAB, dtype=jnp.int32)
    d_ids = d_ids.at[:, -8:].set(PAD)                 # padded doc tail exercises the doc mask
    q_attn = jnp.ones_like(q_ids, dtype=jnp.bool_)
    d_attn = d_ids != PAD

    out = jax.block_until_ready(
        colbert_forward(q_ids, q_attn, d_ids, d_attn, emb_table, w_t, PAD))

    ref = colbert_reference(q_ids, d_ids, emb_table, w_t, PAD)
    np.testing.assert_allclose(np.asarray(out), np.asarray(ref), rtol=1e-2, atol=2e-3)
    assert out.shape == (B, max(N_q, N_p))

    print("KERNEL_OK")
</pallas_src>

<mosaic_0001>
module attributes {stable_mosaic.version = 11 : i64} {
  func.func @proj_norm_kernel(%arg0: i32, %arg1: memref<256x128xbf16, #tpu.memory_space<vmem>>, %arg2: memref<128x128xbf16, #tpu.memory_space<vmem>>, %arg3: memref<256x1xf32, #tpu.memory_space<vmem>>, %arg4: memref<256x128xbf16, #tpu.memory_space<vmem>>) attributes {dimension_semantics = [#tpu.dimension_semantics<parallel>], iteration_bounds = array<i64: 1>, scalar_prefetch = 0 : i64, scratch_operands = 0 : i64, tpu.core_type = #tpu.core_type<tc>, window_params = [{transform_indices = @transform_0, window_bounds = array<i64: 256, 128>}, {pipeline_mode = #tpu.pipeline_mode<synchronous>, transform_indices = @transform_1, window_bounds = array<i64: 128, 128>}, {transform_indices = @transform_2, window_bounds = array<i64: 256, 1>}, {transform_indices = @transform_3, window_bounds = array<i64: 256, 128>}]} {
    %c0 = arith.constant 0 : index
    %c0_0 = arith.constant 0 : index
    %0 = vector.load %arg1[%c0, %c0_0] : memref<256x128xbf16, #tpu.memory_space<vmem>>, vector<256x128xbf16>
    %c0_1 = arith.constant 0 : index
    %c0_2 = arith.constant 0 : index
    %1 = vector.load %arg2[%c0_1, %c0_2] : memref<128x128xbf16, #tpu.memory_space<vmem>>, vector<128x128xbf16>
    %cst = arith.constant dense<0.000000e+00> : vector<256x128xf32>
    %2 = tpu.matmul %0, %1, %cst {dimension_numbers = #tpu.dot_dimension_numbers<[1], [0], [0], [1], [0, 0, 1, 1], [], []>} : vector<256x128xbf16>, vector<128x128xbf16>, vector<256x128xf32> -> vector<256x128xf32>
    %3 = arith.mulf %2, %2 : vector<256x128xf32>
    %cst_3 = arith.constant dense<0.000000e+00> : vector<256xf32>
    %4 = vector.multi_reduction <add>, %3, %cst_3 [1] : vector<256x128xf32> to vector<256xf32>
    %5 = vector.shape_cast %4 : vector<256xf32> to vector<256x1xf32>
    %cst_4 = arith.constant 1.000000e-24 : f32
    %6 = vector.broadcast %cst_4 : f32 to vector<256x1xf32>
    %7 = arith.maximumf %5, %6 : vector<256x1xf32>
    %8 = math.rsqrt %7 : vector<256x1xf32>
    %9 = vector.broadcast %8 : vector<256x1xf32> to vector<256x128xf32>
    %10 = arith.mulf %2, %9 : vector<256x128xf32>
    %c0_5 = arith.constant 0 : index
    %c0_6 = arith.constant 0 : index
    %11 = vector.load %arg3[%c0_5, %c0_6] : memref<256x1xf32, #tpu.memory_space<vmem>>, vector<256x1xf32>
    %12 = vector.broadcast %11 : vector<256x1xf32> to vector<256x128xf32>
    %13 = arith.mulf %10, %12 : vector<256x128xf32>
    %14 = arith.truncf %13 : vector<256x128xf32> to vector<256x128xbf16>
    %c0_7 = arith.constant 0 : index
    %c0_8 = arith.constant 0 : index
    %15 = vector.load %arg4[%c0_7, %c0_8] : memref<256x128xbf16, #tpu.memory_space<vmem>>, vector<256x128xbf16>
    tpu.vector_store %arg4[%c0_7, %c0_8], %14 {strides = array<i32>} : memref<256x128xbf16, #tpu.memory_space<vmem>>, vector<256x128xbf16>,
    return
  }
  func.func @transform_0(%arg0: i32) -> (i32, i32) {
    %c0_i32 = arith.constant 0 : i32
    %c0_i32_0 = arith.constant 0 : i32
    return %arg0, %c0_i32 : i32, i32
  }
  func.func @transform_1(%arg0: i32) -> (i32, i32) {
    %c0_i32 = arith.constant 0 : i32
    %c0_i32_0 = arith.constant 0 : i32
    %c0_i32_1 = arith.constant 0 : i32
    return %c0_i32, %c0_i32_0 : i32, i32
  }
  func.func @transform_2(%arg0: i32) -> (i32, i32) {
    %c0_i32 = arith.constant 0 : i32
    %c0_i32_0 = arith.constant 0 : i32
    return %arg0, %c0_i32 : i32, i32
  }
  func.func @transform_3(%arg0: i32) -> (i32, i32) {
    %c0_i32 = arith.constant 0 : i32
    %c0_i32_0 = arith.constant 0 : i32
    return %arg0, %c0_i32 : i32, i32
  }
}

</mosaic_0001>

<bundles_post_ra>
// kernel: tpu_custom_call.1
= control target key start
LH: loop header
LB: loop body
LE: loop exit
PB: predicated region body
PF: predicated region fallthrough
CT: control target
= control target key end

     0   :  { %v1350_v2 = vmov 0   ;;  %s1801_s0 = inlined_call_operand.vmem [shape: bf16[256,128], index: 0, kind: input, shape index: {}]   ;;  %s1802_s1 = inlined_call_operand.vmem [shape: bf16[128,128], index: 1, kind: input, shape index: {}]   ;;  %s1803_s2 = inlined_call_operand.vmem [shape: f32[256,1], index: 2, kind: input, shape index: {}]   ;;  %s1804_s3 = inlined_call_operand.hbm [shape: bf16[256,128], index: 3, kind: output, shape index: {}]  }
   0x1   :  { %v1238_v0 = vld [vmem:[%s1802_s1] sm:$0xff]   ;;  %v1239_v1 = vld [vmem:[%s1802_s1 + $0x8] sm:$0xff]   ;;  %1237 = vset.pattern.permute.xlu1 %v1350_v2  ;;  %1236 = vset.pattern.permute.xlu0 %v1350_v2  ;;  %v1240_v3 = vld [vmem:[%s1802_s1 + $0x10] sm:$0xff]  }
   0x2   :  { %1168 = vmatprep.subr.bf16.mxu0 %v1238_v0  ;;  %1216 = vmatprep.subr.bf16.mxu1 %v1238_v0  ;;  %v1241_v4 = vld [vmem:[%s1802_s1 + $0x18] sm:$0xff]   ;;  %v1246_v5 = vld [vmem:[%s1801_s0] sm:$0xff]   ;;  %v1243_v8 = vld [vmem:[%s1802_s1 + $0x28] sm:$0xff]  }
   0x3   :  { %1169 = vmatpush3.bf16.msra.mxu0 %v1238_v0  ;;  %1224 = vmatpush3.bf16.msra.mxu1 %v1238_v0  ;;  %v1247_v6 = vld [vmem:[%s1801_s0 + $0x40] sm:$0xff]   ;;  %v1244_v9 = vld [vmem:[%s1802_s1 + $0x30] sm:$0xff]   ;;  %v562_v10 = vld [vmem:[%s1803_s2 + $0x8] sm:$0xff] }
   0x4   :  { %1170 = vmatprep.subr.bf16.mxu0 %v1239_v1  ;;  %1217 = vmatprep.subr.bf16.mxu1 %v1239_v1  ;;  %v1242_v7 = vld [vmem:[%s1802_s1 + $0x20] sm:$0xff]   ;;  %v563_v11 = vld [vmem:[%s1803_s2 + $0x10] sm:$0xff]  ;;  %v1245_v12 = vld [vmem:[%s1802_s1 + $0x38] sm:$0xff]  }
   0x5   :  { %1184 = vmatprep.mubr.bf16.mxu0 %v1246_v5  ;;  %1200 = vmatprep.mubr.bf16.mxu1 %v1247_v6  ;;  %v564_v13 = vld [vmem:[%s1803_s2 + $0x18] sm:$0xff]  ;;  %v561_v14 = vld [vmem:[%s1803_s2] sm:$0xff]  ;;  %v1248_v15 = vld [vmem:[%s1801_s0 + $0x8] sm:$0xff]  }
   0x6   :  { %600 = vperm.xlu1 %1237, %v562_v10   ;;  %595 = vperm.xlu0 %1236, %v561_v14   ;;  %v1249_v16 = vld [vmem:[%s1801_s0 + $0x48] sm:$0xff]   ;;  %v565_v17 = vld [vmem:[%s1803_s2 + $0x20] sm:$0xff]  ;;  %v1250_v19 = vld [vmem:[%s1801_s0 + $0x10] sm:$0xff]  }
   0x7   :  { %1171 = vmatpush3.bf16.msra.mxu0 %v1239_v1  ;;  %1225 = vmatpush3.bf16.msra.mxu1 %v1239_v1  ;;  %v570_v18 = vld [vmem:[%s1803_s2 + $0x48] sm:$0xff]  ;;  %v1252_v20 = vld [vmem:[%s1801_s0 + $0x50] sm:$0xff]   ;;  %v572_v22 = vld [vmem:[%s1803_s2 + $0x58] sm:$0xff] }
   0x8   :  { %1172 = vmatprep.subr.bf16.mxu0 %v1240_v3  ;;  %1218 = vmatprep.subr.bf16.mxu1 %v1240_v3  ;;  %v566_v21 = vld [vmem:[%s1803_s2 + $0x28] sm:$0xff] }
   0xa   :  { %605 = vperm.xlu1 %1237, %v563_v11   ;;  %640 = vperm.xlu0 %1236, %v570_v18  }
   0xb   :  { %1173 = vmatpush3.bf16.msra.mxu0 %v1240_v3  ;;  %1226 = vmatpush3.bf16.msra.mxu1 %v1240_v3 }
   0xc   :  { %1174 = vmatprep.subr.bf16.mxu0 %v1241_v4  ;;  %1219 = vmatprep.subr.bf16.mxu1 %v1241_v4 }
   0xe   :  { %610 = vperm.xlu1 %1237, %v564_v13  }
   0xf   :  { %1175 = vmatpush3.bf16.msra.mxu0 %v1241_v4  ;;  %1227 = vmatpush3.bf16.msra.mxu1 %v1241_v4 }
  0x10   :  { %1176 = vmatprep.subr.bf16.mxu0 %v1242_v7  ;;  %1220 = vmatprep.subr.bf16.mxu1 %v1242_v7 }
  0x12   :  { %615 = vperm.xlu1 %1237, %v565_v17  }
  0x13   :  { %1177 = vmatpush3.bf16.msra.mxu0 %v1242_v7  ;;  %1228 = vmatpush3.bf16.msra.mxu1 %v1242_v7 }
  0x14   :  { %1178 = vmatprep.subr.bf16.mxu0 %v1243_v8  ;;  %1221 = vmatprep.subr.bf16.mxu1 %v1243_v8 }
  0x17   :  { %1179 = vmatpush3.bf16.msra.mxu0 %v1243_v8  ;;  %1229 = vmatpush3.bf16.msra.mxu1 %v1243_v8 }
  0x18   :  { %1180 = vmatprep.subr.bf16.mxu0 %v1244_v9  ;;  %1222 = vmatprep.subr.bf16.mxu1 %v1244_v9 }
  0x1b   :  { %1181 = vmatpush3.bf16.msra.mxu0 %v1244_v9  ;;  %1230 = vmatpush3.bf16.msra.mxu1 %v1244_v9 }
  0x1c   :  { %1182 = vmatprep.subr.bf16.mxu0 %v1245_v12  ;;  %1223 = vmatprep.subr.bf16.mxu1 %v1245_v12 }
  0x1f   :  { %1183 = vmatpush3.bf16.msra.mxu0 %v1245_v12  ;;  %1231 = vmatpush3.bf16.msra.mxu1 %v1245_v12 }
  0x22   :  { %1185 = vmatmul.mubr.bf16.vlgmr.msra.gmra.mrb[0].mxu0 %v1248_v15  ;;  %1201 = vmatmul.mubr.bf16.vlgmr.msra.gmra.mrb[0].mxu1 %v1249_v16 }
  0x23   :  { %8 = vsyncpa [#allocation3], 0  ;;  %1188 = vmatprep.mubr.bf16.mxu0 %v1250_v19  ;;  %1204 = vmatprep.mubr.bf16.mxu1 %v1252_v20  ;;  %v1251_v23 = vld [vmem:[%s1801_s0 + $0x18] sm:$0xff]   ;;  %v567_v25 = vld [vmem:[%s1803_s2 + $0x30] sm:$0xff] }
  0x24   :  { %620 = vperm.xlu1 %1237, %v566_v21   ;;  %650 = vperm.xlu0 %1236, %v572_v22   ;;  %v1253_v24 = vld [vmem:[%s1801_s0 + $0x58] sm:$0xff]   ;;  %v574_v26 = vld [vmem:[%s1803_s2 + $0x68] sm:$0xff]  ;;  %v1254_v27 = vld [vmem:[%s1801_s0 + $0x20] sm:$0xff]  }
  0x25   :  { %v1256_v28 = vld [vmem:[%s1801_s0 + $0x60] sm:$0xff]   ;;  %v568_v29 = vld [vmem:[%s1803_s2 + $0x38] sm:$0xff]  ;;  %v1255_v31 = vld [vmem:[%s1801_s0 + $0x28] sm:$0xff]  }
  0x26   :  { %v576_v30 = vld [vmem:[%s1803_s2 + $0x78] sm:$0xff]  ;;  %v1257_v32 = vld [vmem:[%s1801_s0 + $0x68] sm:$0xff]   ;;  %v569_v33 = vld [vmem:[%s1803_s2 + $0x40] sm:$0xff] }
  0x27   :  { %v578_v34 = vld [vmem:[%s1803_s2 + $0x88] sm:$0xff]  ;;  %v1258_v35 = vld [vmem:[%s1801_s0 + $0x30] sm:$0xff]   ;;  %v580_v38 = vld [vmem:[%s1803_s2 + $0x98] sm:$0xff] }
  0x28   :  { %625 = vperm.xlu1 %1237, %v567_v25   ;;  %660 = vperm.xlu0 %1236, %v574_v26   ;;  %v1260_v36 = vld [vmem:[%s1801_s0 + $0x70] sm:$0xff]   ;;  %v1259_v39 = vld [vmem:[%s1801_s0 + $0x38] sm:$0xff]   ;;  %v573_v41 = vld [vmem:[%s1803_s2 + $0x60] sm:$0xff] }
  0x29   :  { %v571_v37 = vld [vmem:[%s1803_s2 + $0x50] sm:$0xff]  ;;  %v1261_v40 = vld [vmem:[%s1801_s0 + $0x78] sm:$0xff]   ;;  %v582_v42 = vld [vmem:[%s1803_s2 + $0xa8] sm:$0xff] }
  0x2a   :  { %1189 = vmatmul.mubr.bf16.gmra.mrb[4].mxu0 %v1251_v23  ;;  %1205 = vmatmul.mubr.bf16.gmra.mrb[4].mxu1 %v1253_v24  ;;  %v575_v43 = vld [vmem:[%s1803_s2 + $0x70] sm:$0xff]  ;;  %v584_v44 = vld [vmem:[%s1803_s2 + $0xb8] sm:$0xff]  ;;  %v577_v45 = vld [vmem:[%s1803_s2 + $0x80] sm:$0xff] }
  0x2b   :  { %1192 = vmatprep.mubr.bf16.mxu0 %v1254_v27  ;;  %1208 = vmatprep.mubr.bf16.mxu1 %v1256_v28  ;;  %v586_v46 = vld [vmem:[%s1803_s2 + $0xc8] sm:$0xff]  ;;  %v579_v47 = vld [vmem:[%s1803_s2 + $0x90] sm:$0xff]  ;;  %v588_v48 = vld [vmem:[%s1803_s2 + $0xd8] sm:$0xff] }
  0x2c   :  { %630 = vperm.xlu1 %1237, %v568_v29   ;;  %670 = vperm.xlu0 %1236, %v576_v30   ;;  %v581_v49 = vld [vmem:[%s1803_s2 + $0xa0] sm:$0xff]  ;;  %v590_v50 = vld [vmem:[%s1803_s2 + $0xe8] sm:$0xff]  ;;  %v583_v51 = vld [vmem:[%s1803_s2 + $0xb0] sm:$0xff] }
  0x2d   :  { %v585_v52 = vld [vmem:[%s1803_s2 + $0xc0] sm:$0xff]  ;;  %v587_v53 = vld [vmem:[%s1803_s2 + $0xd0] sm:$0xff] }
  0x2e   :  { %v589_v54 = vld [vmem:[%s1803_s2 + $0xe0] sm:$0xff] }
  0x30   :  { %635 = vperm.xlu1 %1237, %v569_v33   ;;  %680 = vperm.xlu0 %1236, %v578_v34  }
  0x32   :  { %1193 = vmatmul.mubr.bf16.gmra.mrb[8].mxu0 %v1255_v31  ;;  %1209 = vmatmul.mubr.bf16.gmra.mrb[8].mxu1 %v1257_v32 }
  0x33   :  { %1196 = vmatprep.mubr.bf16.mxu0 %v1258_v35  ;;  %1212 = vmatprep.mubr.bf16.mxu1 %v1260_v36 }
  0x34   :  { %645 = vperm.xlu1 %1237, %v571_v37   ;;  %690 = vperm.xlu0 %1236, %v580_v38  }
  0x38   :  { %655 = vperm.xlu1 %1237, %v573_v41   ;;  %700 = vperm.xlu0 %1236, %v582_v42  }
  0x3a   :  { %1197 = vmatmul.mubr.bf16.gmra.mrb[12].mxu0 %v1259_v39  ;;  %1213 = vmatmul.mubr.bf16.gmra.mrb[12].mxu1 %v1261_v40 }
  0x3c   :  { %665 = vperm.xlu1 %1237, %v575_v43   ;;  %710 = vperm.xlu0 %1236, %v584_v44  }
  0x40   :  { %675 = vperm.xlu1 %1237, %v577_v45   ;;  %720 = vperm.xlu0 %1236, %v586_v46  }
  0x44   :  { %685 = vperm.xlu1 %1237, %v579_v47   ;;  %730 = vperm.xlu0 %1236, %v588_v48  }
  0x48   :  { %695 = vperm.xlu1 %1237, %v581_v49   ;;  %740 = vperm.xlu0 %1236, %v590_v50  }
  0x4c   :  { %705 = vperm.xlu1 %1237, %v583_v51  }
  0x50   :  { %715 = vperm.xlu1 %1237, %v585_v52  }
  0x54   :  { %725 = vperm.xlu1 %1237, %v587_v53  }
  0x58   :  { %735 = vperm.xlu1 %1237, %v589_v54  }
  0x85   :  { %v1640_v43 = vpop.permute.xlu1 %600 }
  0x89   :  { %v1646_v46 = vpop.permute.xlu1 %605 }
  0x8d   :  { %v1656_v51 = vpop.permute.xlu1 %610 }
  0x91   :  { %v1662_v54 = vpop.permute.xlu1 %615 }
  0xf5   :  { %v1536_v55 = vpop.f32.mrb[0].mxu0  ;;  %v1538_v56 = vpop.f32.mrb[0].mxu1 }
  0xf6   :  { %v1540_v57 = vpop.f32.mrb[1].mxu0  ;;  %v1542_v58 = vpop.f32.mrb[1].mxu1  ;;  %v387_v59 = vmul.f32 %v1538_v56, %v1538_v56  ;;  %v371_v60 = vmul.f32 %v1536_v55, %v1536_v55 }
  0xf7   :  { %v1548_v61 = vpop.f32.mrb[2].mxu0  ;;  %v1550_v62 = vpop.f32.mrb[2].mxu1  ;;  %v369_v1 = vmul.f32 %v1540_v57, %v1540_v57  ;;  %v385_v5 = vmul.f32 %v1542_v58, %v1542_v58 }
  0xf8   :  { %437 = vadd.xlane.f32.xlu0 %v387_v59  ;;  %v1552_v63 = vpop.f32.mrb[3].mxu1  ;;  %405 = vadd.xlane.f32.xlu1 %v371_v60  ;;  %v1554_v0 = vpop.f32.mrb[3].mxu0  ;;  %v372_v2 = vmul.f32 %v1548_v61, %v1548_v61  ;;  %v388_v6 = vmul.f32 %v1550_v62, %v1550_v62 }
  0xf9   :  { %v386_v13 = vmul.f32 %v1552_v63, %v1552_v63  ;;  %v370_v14 = vmul.f32 %v1554_v0, %v1554_v0 }
  0xfc   :  { %401 = vadd.xlane.f32.xlu0 %v369_v1  ;;  %407 = vadd.xlane.f32.xlu1 %v372_v2 }
  0xfd   :  { %v1560_v3 = vpop.f32.mrb[4].mxu0  ;;  %v1562_v4 = vpop.f32.mrb[4].mxu1 }
  0xfe   :  { %v1568_v7 = vpop.f32.mrb[5].mxu0  ;;  %v1570_v8 = vpop.f32.mrb[5].mxu1  ;;  %v375_v17 = vmul.f32 %v1560_v3, %v1560_v3  ;;  %v391_v25 = vmul.f32 %v1562_v4, %v1562_v4 }
  0xff   :  { %v1572_v9 = vpop.f32.mrb[6].mxu0  ;;  %v1574_v10 = vpop.f32.mrb[6].mxu1  ;;  %v373_v29 = vmul.f32 %v1568_v7, %v1568_v7  ;;  %v389_v37 = vmul.f32 %v1570_v8, %v1570_v8 }
 0x100   :  { %433 = vadd.xlane.f32.xlu0 %v385_v5  ;;  %439 = vadd.xlane.f32.xlu1 %v388_v6  ;;  %v1576_v11 = vpop.f32.mrb[7].mxu0  ;;  %v1578_v12 = vpop.f32.mrb[7].mxu1  ;;  %v376_v18 = vmul.f32 %v1572_v9, %v1572_v9  ;;  %v392_v26 = vmul.f32 %v1574_v10, %v1574_v10 }
 0x101   :  { %v374_v30 = vmul.f32 %v1576_v11, %v1576_v11  ;;  %v390_v38 = vmul.f32 %v1578_v12, %v1578_v12  ;;  %v1672_v5 = vpop.permute.xlu1 %620 }
 0x104   :  { %435 = vadd.xlane.f32.xlu1 %v386_v13  ;;  %403 = vadd.xlane.f32.xlu0 %v370_v14  ;;  %v1678_v14 = vpop.permute.xlu0 %595 }
 0x105   :  { %v1584_v15 = vpop.f32.mrb[8].mxu0  ;;  %v1586_v16 = vpop.f32.mrb[8].mxu1 }
 0x106   :  { %v1592_v19 = vpop.f32.mrb[9].mxu0  ;;  %v1594_v20 = vpop.f32.mrb[9].mxu1  ;;  %v379_v39 = vmul.f32 %v1584_v15, %v1584_v15  ;;  %v395_v41 = vmul.f32 %v1586_v16, %v1586_v16 }
 0x107   :  { %v1596_v21 = vpop.f32.mrb[10].mxu0  ;;  %v1598_v22 = vpop.f32.mrb[10].mxu1  ;;  %v377_v44 = vmul.f32 %v1592_v19, %v1592_v19  ;;  %v393_v47 = vmul.f32 %v1594_v20, %v1594_v20 }
 0x108   :  { %413 = vadd.xlane.f32.xlu0 %v375_v17  ;;  %415 = vadd.xlane.f32.xlu1 %v376_v18  ;;  %v1600_v23 = vpop.f32.mrb[11].mxu0  ;;  %v1602_v24 = vpop.f32.mrb[11].mxu1  ;;  %v380_v40 = vmul.f32 %v1596_v21, %v1596_v21  ;;  %v396_v42 = vmul.f32 %v1598_v22, %v1598_v22  ;;  %v591_v17 = vld [vmem:[%s1803_s2 + $0xf0] sm:$0xff] }
 0x109   :  { %v378_v45 = vmul.f32 %v1600_v23, %v1600_v23  ;;  %v394_v48 = vmul.f32 %v1602_v24, %v1602_v24  ;;  %v1674_v6 = vpop.permute.xlu1 %625 }
 0x10c   :  { %445 = vadd.xlane.f32.xlu0 %v391_v25  ;;  %447 = vadd.xlane.f32.xlu1 %v392_v26  ;;  %v1685_v25 = vpop.permute.xlu0 %640  ;;  %v592_v26 = vld [vmem:[%s1803_s2 + $0xf8] sm:$0xff]  ;;  %s1351_s2 = smov [#allocation2]  }
 0x10d   :  { %v1608_v27 = vpop.f32.mrb[12].mxu0  ;;  %v1610_v28 = vpop.f32.mrb[12].mxu1  ;;  %s950_s12 = sshll.u32 %s1351_s2, 4  ;;  %s951_s12 = int_to_ptr.vmem [resolvable:$true] %s950_s12 }
 0x10e   :  { %1813 = vst [vmem:[#allocation5_spill] sm:$0xff] %v1608_v27  ;;  %1814 = vst [vmem:[#allocation6_spill] sm:$0xff] %v1610_v28  ;;  %v1616_v31 = vpop.f32.mrb[13].mxu0  ;;  %v1618_v32 = vpop.f32.mrb[13].mxu1  ;;  %v383_v49 = vmul.f32 %v1608_v27, %v1608_v27  ;;  %v399_v52 = vmul.f32 %v1610_v28, %v1610_v28  ;;  %s1326_s13 = scalar_lea.vmem %s951_s12, 2048  ;;  %p1331_p1 = scmp.lt.s32.totalorder %s951_s12, %s951_s12 }
 0x10f   :  { %1815 = vst [vmem:[#allocation7_spill] sm:$0xff] %v1616_v31  ;;  %1816 = vst [vmem:[#allocation8_spill] sm:$0xff] %v1618_v32  ;;  %v1620_v33 = vpop.f32.mrb[14].mxu0  ;;  %v1622_v34 = vpop.f32.mrb[14].mxu1  ;;  %v381_v60 = vmul.f32 %v1616_v31, %v1616_v31  ;;  %v397_v2 = vmul.f32 %v1618_v32, %v1618_v32  ;;  %p1327_p0 = scmp.ne.s32.totalorder %s951_s12, %s1326_s13  ;;  %p1332_p2 = scmp.lt.s32.totalorder %s1326_s13, %s1326_s13 }
 0x110   :  { %1817 = vst [vmem:[#allocation9_spill] sm:$0xff] %v1620_v33  ;;  %1818 = vst [vmem:[#allocation10_spill] sm:$0xff] %v1622_v34  ;;  %409 = vadd.xlane.f32.xlu0 %v373_v29  ;;  %411 = vadd.xlane.f32.xlu1 %v374_v30  ;;  %v1624_v35 = vpop.f32.mrb[15].mxu0  ;;  %v1626_v36 = vpop.f32.mrb[15].mxu1  ;;  %v384_v50 = vmul.f32 %v1620_v33, %v1620_v33  ;;  %v400_v53 = vmul.f32 %v1622_v34, %v1622_v34 }
 0x111   :  { %1819 = vst [vmem:[#allocation11_spill] sm:$0xff] %v1624_v35  ;;  %1820 = vst [vmem:[#allocation12_spill] sm:$0xff] %v1626_v36  ;;  %v382_v59 = vmul.f32 %v1624_v35, %v1624_v35  ;;  %v398_v1 = vmul.f32 %v1626_v36, %v1626_v36  ;;  %v1676_v13 = vpop.permute.xlu1 %630  ;;  %v1692_v30 = vpop.permute.xlu0 %650  ;;  %p1333_p3 = por %p1332_p2, %p1331_p1 }
 0x113   :  { %p1334_p4 = pnand %p1333_p3, %p1327_p0 }
 0x114   :  { %441 = vadd.xlane.f32.xlu0 %v389_v37  ;;  %443 = vadd.xlane.f32.xlu1 %v390_v38 }
 0x115   :  { %v1683_v18 = vpop.permute.xlu1 %635  ;;  %v1696_v38 = vpop.permute.xlu0 %660 }
 0x116   :  { %1822 = vst [vmem:[#allocation14_spill] sm:$0xff] %v1696_v38 }
 0x118   :  { %421 = vadd.xlane.f32.xlu0 %v379_v39  ;;  %423 = vadd.xlane.f32.xlu1 %v380_v40 }
 0x119   :  { %v1690_v29 = vpop.permute.xlu1 %645  ;;  %v1700_v40 = vpop.permute.xlu0 %670 }
 0x11a   :  { %1824 = vst [vmem:[#allocation16_spill] sm:$0xff] %v1700_v40 }
 0x11c   :  { %453 = vadd.xlane.f32.xlu0 %v395_v41  ;;  %455 = vadd.xlane.f32.xlu1 %v396_v42 }
 0x11d   :  { %v1694_v37 = vpop.permute.xlu1 %655  ;;  %v1704_v42 = vpop.permute.xlu0 %680 }
 0x11e   :  { %1821 = vst [vmem:[#allocation13_spill] sm:$0xff] %v1694_v37 }
 0x120   :  { %417 = vadd.xlane.f32.xlu0 %v377_v44  ;;  %419 = vadd.xlane.f32.xlu1 %v378_v45 }
 0x121   :  { %v1698_v39 = vpop.permute.xlu1 %665  ;;  %v1706_v45 = vpop.permute.xlu0 %690 }
 0x122   :  { %1823 = vst [vmem:[#allocation15_spill] sm:$0xff] %v1698_v39 }
 0x124   :  { %449 = vadd.xlane.f32.xlu0 %v393_v47  ;;  %451 = vadd.xlane.f32.xlu1 %v394_v48 }
 0x125   :  { %v1702_v41 = vpop.permute.xlu1 %675  ;;  %v1710_v48 = vpop.permute.xlu0 %700 }
 0x128   :  { %429 = vadd.xlane.f32.xlu0 %v383_v49  ;;  %431 = vadd.xlane.f32.xlu1 %v384_v50 }
 0x129   :  { %v686_v44 = vpop.permute.xlu1 %685  ;;  %v1714_v50 = vpop.permute.xlu0 %710 }
 0x12c   :  { %461 = vadd.xlane.f32.xlu0 %v399_v52  ;;  %463 = vadd.xlane.f32.xlu1 %v400_v53 }
 0x12d   :  { %v1708_v47 = vpop.permute.xlu1 %695  ;;  %v1718_v53 = vpop.permute.xlu0 %720 }
 0x12e   :  { %1826 = vst [vmem:[#allocation18_spill] sm:$0xff] %v1718_v53 }
 0x130   :  { %425 = vadd.xlane.f32.xlu0 %v381_v60  ;;  %427 = vadd.xlane.f32.xlu1 %v382_v59 }
 0x131   :  { %v1712_v49 = vpop.permute.xlu1 %705  ;;  %v1722_v60 = vpop.permute.xlu0 %730 }
 0x134   :  { %457 = vadd.xlane.f32.xlu0 %v397_v2  ;;  %459 = vadd.xlane.f32.xlu1 %v398_v1 }
 0x135   :  { %v1716_v52 = vpop.permute.xlu1 %715  ;;  %v1726_v2 = vpop.permute.xlu0 %740 }
 0x136   :  { %1825 = vst [vmem:[#allocation17_spill] sm:$0xff] %v1716_v52  ;;  %1828 = vst [vmem:[#allocation20_spill] sm:$0xff] %v1726_v2 }
 0x139   :  { %v1720_v59 = vpop.permute.xlu1 %725 }
 0x13d   :  { %v1724_v1 = vpop.permute.xlu1 %735 }
 0x13e   :  { %1827 = vst [vmem:[#allocation19_spill] sm:$0xff] %v1724_v1 }
 0x145   :  { %745 = vperm.xlu1 %1237, %v591_v17  }
 0x14a   :  { %750 = vperm.xlu0 %1236, %v592_v26  }
 0x185   :  { %v438_v17 = vpop.xlane.xlu0 %437  ;;  %v406_v26 = vpop.xlane.xlu1 %405 }
 0x186   :  { %v467_v36 = vmax.f32 %v406_v26, 1e-24  ;;  %v483_v32 = vmax.f32 %v438_v17, 1e-24 }
 0x188   :  { %1262 = vrsqrt.f32 %v467_v36 }
 0x189   :  { %v402_v38 = vpop.xlane.xlu0 %401  ;;  %v408_v37 = vpop.xlane.xlu1 %407  ;;  %1264 = vrsqrt.f32 %v483_v32 }
 0x18a   :  { %v468_v35 = vmax.f32 %v408_v37, 1e-24  ;;  %v465_v31 = vmax.f32 %v402_v38, 1e-24 }
 0x18c   :  { %1266 = vrsqrt.f32 %v468_v35 }
 0x18d   :  { %v434_v34 = vpop.xlane.xlu0 %433  ;;  %v440_v28 = vpop.xlane.xlu1 %439  ;;  %1268 = vrsqrt.f32 %v465_v31 }
 0x18e   :  { %v481_v40 = vmax.f32 %v434_v34, 1e-24  ;;  %v484_v39 = vmax.f32 %v440_v28, 1e-24 }
 0x190   :  { %1270 = vrsqrt.f32 %v481_v40 }
 0x191   :  { %1272 = vrsqrt.f32 %v484_v39  ;;  %v436_v1 = vpop.xlane.xlu1 %435  ;;  %v404_v2 = vpop.xlane.xlu0 %403 }
 0x192   :  { %v482_v33 = vmax.f32 %v436_v1, 1e-24  ;;  %v466_v27 = vmax.f32 %v404_v2, 1e-24  ;;  %v1263_v26 = vpop.eup %1262 }
 0x193   :  { %v1265_v37 = vpop.eup %1264  ;;  %v531_v32 = vmul.f32 %v1263_v26, %v1536_v55 }
 0x194   :  { %1274 = vrsqrt.f32 %v482_v33  ;;  %v547_v34 = vmul.f32 %v1265_v37, %v1538_v56 }
 0x195   :  { %1276 = vrsqrt.f32 %v466_v27  ;;  %v414_v36 = vpop.xlane.xlu0 %413  ;;  %v416_v17 = vpop.xlane.xlu1 %415  ;;  %v755_v27 = vmul.f32 %v1646_v46, %v531_v32 }
 0x196   :  { %v471_v35 = vmax.f32 %v414_v36, 1e-24  ;;  %v472_v38 = vmax.f32 %v416_v17, 1e-24  ;;  %v1267_v53 = vpop.eup %1266 }
 0x197   :  { %v532_v28 = vmul.f32 %v1267_v53, %v1548_v61  ;;  %v1269_v31 = vpop.eup %1268  ;;  %v771_v61 = vmul.f32 %v686_v44, %v547_v34 }
 0x198   :  { %1278 = vrsqrt.f32 %v471_v35  ;;  %v529_v35 = vmul.f32 %v1269_v31, %v1540_v57 }
 0x199   :  { %1280 = vrsqrt.f32 %v472_v38  ;;  %v446_v39 = vpop.xlane.xlu0 %445  ;;  %v448_v40 = vpop.xlane.xlu1 %447  ;;  %v756_v33 = vmul.f32 %v1656_v51, %v532_v28 }
 0x19a   :  { %v1271_v1 = vpop.eup %1270  ;;  %v487_v2 = vmax.f32 %v446_v39, 1e-24  ;;  %v488_v52 = vmax.f32 %v448_v40, 1e-24  ;;  %v753_v31 = vmul.f32 %v1678_v14, %v529_v35 }
 0x19b   :  { %v1273_v55 = vpop.eup %1272  ;;  %v1057_v26 = vpack.c.bf16 %v756_v33, %v755_v27  ;;  %v545_v53 = vmul.f32 %v1271_v1, %v1542_v58 }
 0x19c   :  { %v548_v36 = vmul.f32 %v1273_v55, %v1550_v62  ;;  %1282 = vrsqrt.f32 %v487_v2 }
 0x19d   :  { %1284 = vrsqrt.f32 %v488_v52  ;;  %v410_v56 = vpop.xlane.xlu0 %409  ;;  %v412_v17 = vpop.xlane.xlu1 %411  ;;  %1129 = vst [vmem:[#allocation2 + $0x8] sm:$0xff] %v1057_v26   ;;  %v769_v58 = vmul.f32 %v1702_v41, %v545_v53 }
 0x19e   :  { %v1275_v37 = vpop.eup %1274  ;;  %v772_v46 = vmul.f32 %v1706_v45, %v548_v36  ;;  %v469_v51 = vmax.f32 %v410_v56, 1e-24  ;;  %v470_v32 = vmax.f32 %v412_v17, 1e-24 }
 0x19f   :  { %v1277_v38 = vpop.eup %1276  ;;  %v546_v28 = vmul.f32 %v1275_v37, %v1552_v63 }
 0x1a0   :  { %v1097_v39 = vpack.c.bf16 %v772_v46, %v771_v61  ;;  %v530_v62 = vmul.f32 %v1277_v38, %v1554_v0  ;;  %1286 = vrsqrt.f32 %v469_v51 }
 0x1a1   :  { %v770_v44 = vmul.f32 %v1704_v42, %v546_v28  ;;  %1288 = vrsqrt.f32 %v470_v32  ;;  %v442_v52 = vpop.xlane.xlu0 %441  ;;  %v444_v34 = vpop.xlane.xlu1 %443 }
 0x1a2   :  { %v1279_v57 = vpop.eup %1278  ;;  %1137 = vst [vmem:[#allocation2 + $0x48] sm:$0xff] %v1097_v39   ;;  %v754_v45 = vmul.f32 %v1640_v43, %v530_v62  ;;  %v485_v40 = vmax.f32 %v442_v52, 1e-24  ;;  %v486_v1 = vmax.f32 %v444_v34, 1e-24 }
 0x1a3   :  { %v1281_v63 = vpop.eup %1280  ;;  %v1092_v27 = vpack.c.bf16 %v770_v44, %v769_v58  ;;  %v535_v0 = vmul.f32 %v1279_v57, %v1560_v3 }
 0x1a4   :  { %v1052_v33 = vpack.c.bf16 %v754_v45, %v753_v31  ;;  %v536_v41 = vmul.f32 %v1281_v63, %v1572_v9  ;;  %1290 = vrsqrt.f32 %v485_v40 }
 0x1a5   :  { %1136 = vst [vmem:[#allocation2 + $0x40] sm:$0xff] %v1092_v27   ;;  %v759_v42 = vmul.f32 %v1674_v6, %v535_v0  ;;  %1292 = vrsqrt.f32 %v486_v1  ;;  %v422_v2 = vpop.xlane.xlu0 %421  ;;  %v424_v55 = vpop.xlane.xlu1 %423 }
 0x1a6   :  { %v1283_v14 = vpop.eup %1282  ;;  %1053 = vst [vmem:[#allocation2] sm:$0xff] %v1052_v33   ;;  %v760_v43 = vmul.f32 %v1676_v13, %v536_v41  ;;  %v475_v26 = vmax.f32 %v422_v2, 1e-24  ;;  %v476_v36 = vmax.f32 %v424_v55, 1e-24 }
 0x1a7   :  { %v1285_v61 = vpop.eup %1284  ;;  %v551_v53 = vmul.f32 %v1283_v14, %v1562_v4 }
 0x1a8   :  { %v1067_v3 = vpack.c.bf16 %v760_v43, %v759_v42  ;;  %v552_v56 = vmul.f32 %v1285_v61, %v1574_v10  ;;  %1294 = vrsqrt.f32 %v475_v26 }
 0x1a9   :  { %v775_v9 = vmul.f32 %v1712_v49, %v551_v53  ;;  %1296 = vrsqrt.f32 %v476_v36  ;;  %v454_v6 = vpop.xlane.xlu0 %453  ;;  %v456_v17 = vpop.xlane.xlu1 %455 }
 0x1aa   :  { %v1287_v37 = vpop.eup %1286  ;;  %1131 = vst [vmem:[#allocation2 + $0x18] sm:$0xff] %v1067_v3   ;;  %v776_v35 = vmul.f32 %v1714_v50, %v552_v56  ;;  %v491_v46 = vmax.f32 %v454_v6, 1e-24  ;;  %v492_v13 = vmax.f32 %v456_v17, 1e-24 }
 0x1ab   :  { %v1289_v51 = vpop.eup %1288  ;;  %v533_v32 = vmul.f32 %v1287_v37, %v1568_v7 }
 0x1ac   :  { %v1107_v38 = vpack.c.bf16 %v776_v35, %v775_v9  ;;  %v534_v4 = vmul.f32 %v1289_v51, %v1576_v11  ;;  %1298 = vrsqrt.f32 %v491_v46 }
 0x1ad   :  { %v757_v10 = vmul.f32 %v1662_v54, %v533_v32  ;;  %1300 = vrsqrt.f32 %v492_v13  ;;  %v418_v49 = vpop.xlane.xlu0 %417  ;;  %v420_v28 = vpop.xlane.xlu1 %419 }
 0x1ae   :  { %v1291_v39 = vpop.eup %1290  ;;  %1139 = vst [vmem:[#allocation2 + $0x58] sm:$0xff] %v1107_v38   ;;  %v758_v62 = vmul.f32 %v1672_v5, %v534_v4  ;;  %v473_v58 = vmax.f32 %v418_v49, 1e-24  ;;  %v474_v50 = vmax.f32 %v420_v28, 1e-24  ;;  %v1830_v4 = vld [vmem:[#allocation18_spill] sm:$0xff] }
 0x1af   :  { %v1293_v44 = vpop.eup %1292  ;;  %v549_v52 = vmul.f32 %v1291_v39, %v1570_v8  ;;  %v1831_v39 = vld [vmem:[#allocation5_spill] sm:$0xff] }
 0x1b0   :  { %v1062_v34 = vpack.c.bf16 %v758_v62, %v757_v10  ;;  %v550_v7 = vmul.f32 %v1293_v44, %v1578_v12  ;;  %1302 = vrsqrt.f32 %v473_v58 }
 0x1b1   :  { %v773_v11 = vmul.f32 %v1708_v47, %v549_v52  ;;  %1304 = vrsqrt.f32 %v474_v50  ;;  %v450_v54 = vpop.xlane.xlu0 %449  ;;  %v452_v57 = vpop.xlane.xlu1 %451 }
 0x1b2   :  { %v1295_v31 = vpop.eup %1294  ;;  %1130 = vst [vmem:[#allocation2 + $0x10] sm:$0xff] %v1062_v34   ;;  %v774_v45 = vmul.f32 %v1710_v48, %v550_v7  ;;  %v489_v40 = vmax.f32 %v450_v54, 1e-24  ;;  %v490_v5 = vmax.f32 %v452_v57, 1e-24  ;;  %v1834_v34 = vld [vmem:[#allocation16_spill] sm:$0xff] }
 0x1b3   :  { %v1297_v1 = vpop.eup %1296  ;;  %v539_v63 = vmul.f32 %v1295_v31, %v1584_v15  ;;  %v1835_v54 = vld [vmem:[#allocation6_spill] sm:$0xff] }
 0x1b4   :  { %v1102_v27 = vpack.c.bf16 %v774_v45, %v773_v11  ;;  %v540_v8 = vmul.f32 %v1297_v1, %v1596_v21  ;;  %1306 = vrsqrt.f32 %v489_v40  ;;  %v1836_v40 = vld [vmem:[#allocation10_spill] sm:$0xff] }
 0x1b5   :  { %v763_v12 = vmul.f32 %v1690_v29, %v539_v63  ;;  %1308 = vrsqrt.f32 %v490_v5  ;;  %v430_v47 = vpop.xlane.xlu0 %429  ;;  %v432_v0 = vpop.xlane.xlu1 %431 }
 0x1b6   :  { %v1299_v33 = vpop.eup %1298  ;;  %1138 = vst [vmem:[#allocation2 + $0x50] sm:$0xff] %v1102_v27   ;;  %v764_v41 = vmul.f32 %v1692_v30, %v540_v8  ;;  %v479_v42 = vmax.f32 %v430_v47, 1e-24  ;;  %v480_v48 = vmax.f32 %v432_v0, 1e-24  ;;  %v1837_v47 = vld [vmem:[#allocation7_spill] sm:$0xff] }
 0x1b7   :  { %v1301_v2 = vpop.eup %1300  ;;  %v555_v55 = vmul.f32 %v1299_v33, %v1586_v16  ;;  %v1838_v33 = vld [vmem:[#allocation11_spill] sm:$0xff] }
 0x1b8   :  { %v1077_v14 = vpack.c.bf16 %v764_v41, %v763_v12  ;;  %v556_v15 = vmul.f32 %v1301_v2, %v1598_v22  ;;  %1310 = vrsqrt.f32 %v479_v42 }
 0x1b9   :  { %v779_v21 = vmul.f32 %v1720_v59, %v555_v55  ;;  %1312 = vrsqrt.f32 %v480_v48  ;;  %v462_v29 = vpop.xlane.xlu0 %461  ;;  %v464_v43 = vpop.xlane.xlu1 %463  ;;  %v1839_v48 = vld [vmem:[#allocation13_spill] sm:$0xff] }
 0x1ba   :  { %v1303_v26 = vpop.eup %1302  ;;  %1133 = vst [vmem:[#allocation2 + $0x28] sm:$0xff] %v1077_v14   ;;  %v780_v36 = vmul.f32 %v1722_v60, %v556_v15  ;;  %v495_v61 = vmax.f32 %v462_v29, 1e-24  ;;  %v496_v30 = vmax.f32 %v464_v43, 1e-24  ;;  %v1840_v14 = vld [vmem:[#allocation14_spill] sm:$0xff] }
 0x1bb   :  { %v1305_v53 = vpop.eup %1304  ;;  %v537_v3 = vmul.f32 %v1303_v26, %v1592_v19  ;;  %v1841_v29 = vld [vmem:[#allocation8_spill] sm:$0xff] }
 0x1bc   :  { %v1117_v56 = vpack.c.bf16 %v780_v36, %v779_v21  ;;  %v538_v16 = vmul.f32 %v1305_v53, %v1600_v23  ;;  %1314 = vrsqrt.f32 %v495_v61  ;;  %v1829_v23 = vld [vmem:[#allocation17_spill] sm:$0xff]  ;;  %v1842_v36 = vld [vmem:[#allocation12_spill] sm:$0xff] }
 0x1bd   :  { %v761_v22 = vmul.f32 %v1683_v18, %v537_v3  ;;  %1316 = vrsqrt.f32 %v496_v30  ;;  %v426_v59 = vpop.xlane.xlu0 %425  ;;  %v428_v9 = vpop.xlane.xlu1 %427  ;;  %v1843_v30 = vld [vmem:[#allocation19_spill] sm:$0xff]  ;;  %v1844_v3 = vld [vmem:[#allocation20_spill] sm:$0xff] }
 0x1be   :  { %v1307_v6 = vpop.eup %1306  ;;  %1141 = vst [vmem:[#allocation2 + $0x68] sm:$0xff] %v1117_v56   ;;  %v762_v17 = vmul.f32 %v1685_v25, %v538_v16  ;;  %v477_v37 = vmax.f32 %v426_v59, 1e-24  ;;  %v478_v60 = vmax.f32 %v428_v9, 1e-24 }
 0x1bf   :  { %v1309_v35 = vpop.eup %1308  ;;  %v553_v46 = vmul.f32 %v1307_v6, %v1594_v20  ;;  %v1832_v20 = vld [vmem:[#allocation9_spill] sm:$0xff] }
 0x1c0   :  { %v1072_v13 = vpack.c.bf16 %v762_v17, %v761_v22  ;;  %v554_v19 = vmul.f32 %v1309_v35, %v1602_v24  ;;  %1318 = vrsqrt.f32 %v477_v37  ;;  %v1833_v24 = vld [vmem:[#allocation15_spill] sm:$0xff] }
 0x1c1   :  { %v777_v51 = vmul.f32 %v1829_v23, %v553_v46  ;;  %1320 = vrsqrt.f32 %v478_v60  ;;  %v458_v18 = vpop.xlane.xlu0 %457  ;;  %v460_v32 = vpop.xlane.xlu1 %459 }
 0x1c2   :  { %v1311_v38 = vpop.eup %1310  ;;  %1132 = vst [vmem:[#allocation2 + $0x20] sm:$0xff] %v1072_v13   ;;  %v778_v10 = vmul.f32 %v1830_v4, %v554_v19  ;;  %v493_v49 = vmax.f32 %v458_v18, 1e-24  ;;  %v494_v25 = vmax.f32 %v460_v32, 1e-24 }
 0x1c3   :  { %v1313_v28 = vpop.eup %1312  ;;  %v543_v62 = vmul.f32 %v1311_v38, %v1831_v39 }
 0x1c4   :  { %v1112_v58 = vpack.c.bf16 %v778_v10, %v777_v51  ;;  %v544_v50 = vmul.f32 %v1313_v28, %v1832_v20  ;;  %1322 = vrsqrt.f32 %v493_v49 }
 0x1c5   :  { %v767_v44 = vmul.f32 %v1833_v24, %v543_v62  ;;  %1324 = vrsqrt.f32 %v494_v25  ;;  %v746_v45 = vpop.permute.xlu1 %745 }
 0x1c6   :  { %v1315_v52 = vpop.eup %1314  ;;  %1140 = vst [vmem:[#allocation2 + $0x60] sm:$0xff] %v1112_v58   ;;  %v768_v7 = vmul.f32 %v1834_v34, %v544_v50 }
 0x1c7   :  { %v1317_v11 = vpop.eup %1316  ;;  %v559_v57 = vmul.f32 %v1315_v52, %v1835_v54 }
 0x1c8   :  { %v1087_v31 = vpack.c.bf16 %v768_v7, %v767_v44  ;;  %v560_v5 = vmul.f32 %v1317_v11, %v1836_v40 }
 0x1c9   :  { %v783_v1 = vmul.f32 %v746_v45, %v559_v57  ;;  %v751_v63 = vpop.permute.xlu0 %750 }
 0x1ca   :  { %v1319_v27 = vpop.eup %1318  ;;  %1135 = vst [vmem:[#allocation2 + $0x38] sm:$0xff] %v1087_v31   ;;  %v784_v8 = vmul.f32 %v751_v63, %v560_v5 }
 0x1cb   :  { %v1321_v12 = vpop.eup %1320  ;;  %v541_v0 = vmul.f32 %v1319_v27, %v1837_v47 }
 0x1cc   :  { %v542_v41 = vmul.f32 %v1321_v12, %v1838_v33  ;;  %v1127_v42 = vpack.c.bf16 %v784_v8, %v783_v1 }
 0x1cd   :  { %v765_v2 = vmul.f32 %v1839_v48, %v541_v0 }
 0x1ce   :  { %v1323_v55 = vpop.eup %1322  ;;  %v766_v15 = vmul.f32 %v1840_v14, %v542_v41  ;;  %1143 = vst [vmem:[#allocation2 + $0x78] sm:$0xff] %v1127_v42  }
 0x1cf   :  { %v1325_v21 = vpop.eup %1324  ;;  %v557_v43 = vmul.f32 %v1323_v55, %v1841_v29 }
 0x1d0   :  { %v1082_v26 = vpack.c.bf16 %v766_v15, %v765_v2  ;;  %v558_v61 = vmul.f32 %v1325_v21, %v1842_v36 }
 0x1d1   :  { %v781_v53 = vmul.f32 %v1843_v30, %v557_v43 }
 0x1d2   :  { %1134 = vst [vmem:[#allocation2 + $0x30] sm:$0xff] %v1082_v26   ;;  %v782_v56 = vmul.f32 %v1844_v3, %v558_v61 }
 0x1d4   :  { %v1122_v16 = vpack.c.bf16 %v782_v56, %v781_v53 }
 0x1d6   :  { %1142 = vst [vmem:[#allocation2 + $0x70] sm:$0xff] %v1122_v16  }
 0x1d7   :  { %1337 = shalt.err (!%p1334_p4)
}
 0x1d8   :  { %s1338_s15 = scalar_lea.hbm %s1804_s3, 2048 }
 0x1d9   :  { %p1339_p5 = scmp.ne.s32.totalorder %s1804_s3, %s1338_s15  ;;  %p1342_p6 = scmp.lt.u32.totalorder %s1338_s15, %s1804_s3 }
 0x1db   :  { %p1344_p7 = pnand %p1342_p6, %p1339_p5 }
 0x1dd   :  { %1347 = shalt.err (!%p1344_p7)
}
 0x1de   :  { %s1352_s19 = smov 64   ;;  %s1353_s20 = smov 4  }
 0x1df   :  { %956 = dma.vmem_to_hbm [thread:$0]  %s951_s12, 2048, %s1804_s3, [#allocation3], %s1352_s19, %s1352_s19, %s1353_s20  }
 0x1e0   :  { %1348 = dma.done.wait [#allocation3], 2048  }
 0x1e1   :  { %1349 = vsyncadd [#allocation3], 4294965248 }
 0x1e2   :  { %960 = vsyncpa [#allocation3], 1 }

</bundles_post_ra>
